<compile_context>
chip_gen: v7x
topology: tpu7x:2x2x1
jax: 0.10.0
libtpu: 0.0.40
codegen_flags: <defaults>
</compile_context>

<pallas_src>
import jax
import jax.numpy as jnp
from jax import lax
from jax.experimental import pallas as pl
from jax.experimental.pallas import tpu as pltpu


def _round_up(v, m):
    return ((v + m - 1) // m) * m


# --------------------------------------------------------------------------
# Small path: tiny in/out features (the module's Linear(3, 1)) — VPU only.
# --------------------------------------------------------------------------
def _small_linear_kernel(w_ref, b_ref, x_ref, o_ref):
    # w_ref: SMEM (out_f, in_f)  (PyTorch layout, scalar reads)
    # b_ref: SMEM (out_f,)
    # x_ref: VMEM (rows_blk, in_f)
    # o_ref: VMEM (rows_blk, out_f)
    in_f = x_ref.shape[1]
    out_f = o_ref.shape[1]
    x = x_ref[...].astype(jnp.float32)

    cols = []
    for j in range(out_f):                      # out_f is tiny (1 here)
        acc = x[:, 0:1] * w_ref[j, 0]
        for kk in range(1, in_f):               # in_f is tiny (3 here)
            acc = acc + x[:, kk:kk + 1] * w_ref[j, kk]
        cols.append(acc + b_ref[j])
    out = cols[0] if out_f == 1 else jnp.concatenate(cols, axis=1)
    o_ref[...] = out.astype(o_ref.dtype)


def _linear_small(x, weight, bias, *, out_dtype, rows_blk=1024):
    m, in_f = x.shape
    out_f = weight.shape[0]

    # Row-tile so big batches stream through VMEM (double-buffered by Pallas)
    # instead of requiring whole-array residency.
    mp = _round_up(m, 8)
    rows_blk = min(rows_blk, mp)
    mp = _round_up(mp, rows_blk)
    if mp != m:
        x = jnp.pad(x, ((0, mp - m), (0, 0)))

    out = pl.pallas_call(
        _small_linear_kernel,
        out_shape=jax.ShapeDtypeStruct((mp, out_f), out_dtype),
        grid_spec=pltpu.PrefetchScalarGridSpec(
            num_scalar_prefetch=0,
            grid=(mp // rows_blk,),
            in_specs=[
                pl.BlockSpec(memory_space=pltpu.MemorySpace.SMEM),     # weight
                pl.BlockSpec(memory_space=pltpu.MemorySpace.SMEM),     # bias
                pl.BlockSpec((rows_blk, in_f), lambda i: (i, 0)),      # x
            ],
            out_specs=pl.BlockSpec((rows_blk, out_f), lambda i: (i, 0)),
        ),
        compiler_params=pltpu.CompilerParams(
            dimension_semantics=("parallel",),
        ),
    )(weight.astype(jnp.float32), bias.astype(jnp.float32), x)
    return out[:m] if mp != m else out


# --------------------------------------------------------------------------
# General path: tiled MXU matmul, reduction axis last (P1 + P3 + P9).
# --------------------------------------------------------------------------
def _tiled_kernel_out_acc(x_ref, w_ref, b_ref, o_ref):
    """f32 output: accumulate directly into the resident output block."""
    k = pl.program_id(2)

    @pl.when(k == 0)
    def _():
        o_ref[...] = jnp.broadcast_to(b_ref[...], o_ref.shape)

    # x_ref: (tm, tk); w_ref: (tk, tn) -- weight already transposed host-side,
    # so this is the plain MXU contraction with no per-tile RHS relayout.
    o_ref[...] += jnp.dot(x_ref[...], w_ref[...],
                          preferred_element_type=jnp.float32)


def _tiled_kernel_scratch_acc(x_ref, w_ref, b_ref, o_ref, acc_ref):
    """Narrow output dtype: keep an f32 VMEM accumulator, cast on last k."""
    k = pl.program_id(2)

    @pl.when(k == 0)
    def _():
        acc_ref[...] = jnp.broadcast_to(b_ref[...], acc_ref.shape)

    acc_ref[...] += jnp.dot(x_ref[...], w_ref[...],
                            preferred_element_type=jnp.float32)

    @pl.when(k == pl.num_programs(2) - 1)
    def _():
        o_ref[...] = acc_ref[...].astype(o_ref.dtype)


def _linear_tiled(x, weight, bias, *, out_dtype, tm, tn, tk):
    m, k_dim = x.shape
    n = weight.shape[0]

    # bf16-native MXU: cast f32 inputs down, keep f32 accumulation.
    if x.dtype == jnp.float32:
        x = x.astype(jnp.bfloat16)
    # One-time host-side transpose to (K, N): amortized across calls in a real
    # module; keeps the kernel on the standard contraction and N on lanes.
    w_t = weight.T
    if w_t.dtype == jnp.float32:
        w_t = w_t.astype(jnp.bfloat16)
    bias = bias.astype(jnp.float32)

    # Clamp tiles to the (tiling-aligned) problem, then pad to tile multiples
    # so unaligned shapes stay on the MXU path.
    tm = min(tm, _round_up(m, 8))
    tn = min(tn, _round_up(n, 128))
    tk = min(tk, _round_up(k_dim, 128))
    mp = _round_up(m, tm)
    kp = _round_up(k_dim, tk)
    np_ = _round_up(n, tn)
    if (mp, kp) != (m, k_dim):
        x = jnp.pad(x, ((0, mp - m), (0, kp - k_dim)))
    if (kp, np_) != (k_dim, n):
        w_t = jnp.pad(w_t, ((0, kp - k_dim), (0, np_ - n)))
    if np_ != n:
        bias = jnp.pad(bias, (0, np_ - n))

    grid = (mp // tm, np_ // tn, kp // tk)

    acc_in_out = jnp.dtype(out_dtype) == jnp.dtype(jnp.float32)
    if acc_in_out:
        kernel = _tiled_kernel_out_acc
        scratch = []
    else:
        kernel = _tiled_kernel_scratch_acc
        scratch = [pltpu.VMEM((tm, tn), jnp.float32)]

    # VMEM budget: double-buffered inputs/outputs + accumulator + bias,
    # with 2x headroom, capped at 48 MiB so the plan also fits v7x (64 MiB).
    out_isz = jnp.dtype(out_dtype).itemsize
    vmem_est = (2 * (tm * tk * x.dtype.itemsize
                     + tk * tn * w_t.dtype.itemsize
                     + tm * tn * out_isz)
                + tm * tn * 4 + 2 * tn * 4)
    vmem_limit = int(min(max(2 * vmem_est, 32 * 1024 * 1024),
                         48 * 1024 * 1024))

    out = pl.pallas_call(
        kernel,
        out_shape=jax.ShapeDtypeStruct((mp, np_), out_dtype),
        grid_spec=pltpu.PrefetchScalarGridSpec(
            num_scalar_prefetch=0,
            grid=grid,
            in_specs=[
                pl.BlockSpec((tm, tk), lambda i, j, k: (i, k)),   # x
                pl.BlockSpec((tk, tn), lambda i, j, k: (k, j)),   # weight.T
                pl.BlockSpec((1, tn), lambda i, j, k: (0, j)),    # bias
            ],
            out_specs=pl.BlockSpec((tm, tn), lambda i, j, k: (i, j)),
            scratch_shapes=scratch,
        ),
        compiler_params=pltpu.CompilerParams(
            dimension_semantics=("parallel", "parallel", "arbitrary"),
            vmem_limit_bytes=vmem_limit,
        ),
    )(x, w_t, bias.reshape(1, np_))

    if (mp, np_) != (m, n):
        out = out[:m, :n]
    return out


# --------------------------------------------------------------------------
# Dispatcher: Pallas equivalent of nn.Linear forward (y = x @ W^T + b).
# --------------------------------------------------------------------------
def my_linear(x, weight, bias, *, tm=512, tn=256, tk=1024, out_dtype=None):
    """x: (N, in_f); weight: (out_f, in_f) [PyTorch layout]; bias: (out_f,)."""
    out_dtype = x.dtype if out_dtype is None else out_dtype
    _, k_dim = x.shape
    n = weight.shape[0]
    # Feature dims big enough to feed the MXU -> tiled path (padding handles
    # any alignment); tiny feature dims (the module's Linear(3, 1)) -> VPU
    # path with a row grid (MXU is useless at in=3/out=1).
    if k_dim >= 64 and n >= 8:
        return _linear_tiled(x, weight, bias, out_dtype=out_dtype,
                             tm=tm, tn=tn, tk=tk)
    return _linear_small(x, weight, bias, out_dtype=out_dtype)


if __name__ == "__main__":
    key = jax.random.PRNGKey(0)
    k_x, k_w, k_b, k_x2, k_w2, k_b2 = jax.random.split(key, 6)

    # ---- The module's case: nn.Linear(3, 1), small batch (VPU small path) ---
    in_features, out_features, batch = 3, 1, 8
    bound = 1.0 / (in_features ** 0.5)
    weight = jax.random.uniform(k_w, (out_features, in_features),
                                minval=-bound, maxval=bound, dtype=jnp.float32)
    bias = jax.random.uniform(k_b, (out_features,),
                              minval=-bound, maxval=bound, dtype=jnp.float32)
    x = jax.random.normal(k_x, (batch, in_features), dtype=jnp.float32)

    out = jax.block_until_ready(my_linear(x, weight, bias))
    ref = jnp.dot(x, weight.T, precision=lax.Precision.HIGHEST) + bias
    assert out.shape == (batch, out_features)
    assert jnp.allclose(out, ref, atol=1e-5, rtol=1e-5)

    # ---- Tiled MXU path: UNALIGNED shapes exercise padding + multi-k
    # accumulation (small explicit tiles keep the test cheap; production uses
    # the 512/256/1024 defaults). --------------------------------------------
    M, K, N = 320, 384, 200
    xb = jax.random.normal(k_x2, (M, K), dtype=jnp.float32)
    wb = 0.05 * jax.random.normal(k_w2, (N, K), dtype=jnp.float32)
    bb = jax.random.normal(k_b2, (N,), dtype=jnp.float32)

    out_big = jax.block_until_ready(
        my_linear(xb, wb, bb, tm=128, tn=128, tk=128))
    x16 = xb.astype(jnp.bfloat16).astype(jnp.float32)
    w16 = wb.astype(jnp.bfloat16).astype(jnp.float32)
    ref_big = jnp.dot(x16, w16.T, precision=lax.Precision.HIGHEST) + bb
    assert out_big.shape == (M, N)
    assert jnp.allclose(out_big, ref_big, atol=2e-2, rtol=2e-2)

    print("KERNEL_OK")
</pallas_src>

<mosaic_0001>
module attributes {stable_mosaic.version = 11 : i64} {
  func.func @_small_linear_kernel(%arg0: i32, %arg1: memref<1x3xf32, #tpu.memory_space<smem>>, %arg2: memref<1xf32, #tpu.memory_space<smem>>, %arg3: memref<8x3xf32, #tpu.memory_space<vmem>>, %arg4: memref<8x1xf32, #tpu.memory_space<vmem>>) attributes {dimension_semantics = [#tpu.dimension_semantics<parallel>], iteration_bounds = array<i64: 1>, scalar_prefetch = 0 : i64, scratch_operands = 0 : i64, tpu.core_type = #tpu.core_type<tc>, window_params = [{transform_indices = @transform_0, window_bounds = array<i64: 1, 3>}, {transform_indices = @transform_1, window_bounds = array<i64: 1>}, {transform_indices = @transform_2, window_bounds = array<i64: 8, 3>}, {transform_indices = @transform_3, window_bounds = array<i64: 8, 1>}]} {
    %c0 = arith.constant 0 : index
    %c0_0 = arith.constant 0 : index
    %0 = vector.load %arg3[%c0, %c0_0] : memref<8x3xf32, #tpu.memory_space<vmem>>, vector<8x3xf32>
    %1 = vector.extract_strided_slice %0 {offsets = [0, 0], sizes = [8, 1], strides = [1, 1]} : vector<8x3xf32> to vector<8x1xf32>
    %c0_1 = arith.constant 0 : index
    %c0_2 = arith.constant 0 : index
    %2 = memref.load %arg1[%c0_1, %c0_2] : memref<1x3xf32, #tpu.memory_space<smem>>
    %3 = vector.broadcast %2 : f32 to vector<8x1xf32>
    %4 = arith.mulf %1, %3 : vector<8x1xf32>
    %5 = vector.extract_strided_slice %0 {offsets = [0, 1], sizes = [8, 1], strides = [1, 1]} : vector<8x3xf32> to vector<8x1xf32>
    %c0_3 = arith.constant 0 : index
    %c1 = arith.constant 1 : index
    %6 = memref.load %arg1[%c0_3, %c1] : memref<1x3xf32, #tpu.memory_space<smem>>
    %7 = vector.broadcast %6 : f32 to vector<8x1xf32>
    %8 = arith.mulf %5, %7 : vector<8x1xf32>
    %9 = arith.addf %4, %8 : vector<8x1xf32>
    %10 = vector.extract_strided_slice %0 {offsets = [0, 2], sizes = [8, 1], strides = [1, 1]} : vector<8x3xf32> to vector<8x1xf32>
    %c0_4 = arith.constant 0 : index
    %c2 = arith.constant 2 : index
    %11 = memref.load %arg1[%c0_4, %c2] : memref<1x3xf32, #tpu.memory_space<smem>>
    %12 = vector.broadcast %11 : f32 to vector<8x1xf32>
    %13 = arith.mulf %10, %12 : vector<8x1xf32>
    %14 = arith.addf %9, %13 : vector<8x1xf32>
    %c0_5 = arith.constant 0 : index
    %15 = memref.load %arg2[%c0_5] : memref<1xf32, #tpu.memory_space<smem>>
    %16 = vector.broadcast %15 : f32 to vector<8x1xf32>
    %17 = arith.addf %14, %16 : vector<8x1xf32>
    %c0_6 = arith.constant 0 : index
    %c0_7 = arith.constant 0 : index
    %18 = vector.load %arg4[%c0_6, %c0_7] : memref<8x1xf32, #tpu.memory_space<vmem>>, vector<8x1xf32>
    tpu.vector_store %arg4[%c0_6, %c0_7], %17 {strides = array<i32>} : memref<8x1xf32, #tpu.memory_space<vmem>>, vector<8x1xf32>,
    return
  }
  func.func @transform_0(%arg0: i32) -> (i32, i32) {
    %c0_i32 = arith.constant 0 : i32
    %c0_i32_0 = arith.constant 0 : i32
    %c0_i32_1 = arith.constant 0 : i32
    return %c0_i32, %c0_i32_0 : i32, i32
  }
  func.func @transform_1(%arg0: i32) -> i32 {
    %c0_i32 = arith.constant 0 : i32
    %c0_i32_0 = arith.constant 0 : i32
    return %c0_i32 : i32
  }
  func.func @transform_2(%arg0: i32) -> (i32, i32) {
    %c0_i32 = arith.constant 0 : i32
    %c0_i32_0 = arith.constant 0 : i32
    return %arg0, %c0_i32 : i32, i32
  }
  func.func @transform_3(%arg0: i32) -> (i32, i32) {
    %c0_i32 = arith.constant 0 : i32
    %c0_i32_0 = arith.constant 0 : i32
    return %arg0, %c0_i32 : i32, i32
  }
}

</mosaic_0001>

<bundles_post_ra>
// kernel: tpu_custom_call.1
= control target key start
LH: loop header
LB: loop body
LE: loop exit
PB: predicated region body
PF: predicated region fallthrough
CT: control target
= control target key end

     0   :  { %9 = vsyncpa [#allocation4], 0  ;;  %s112_s0 = inlined_call_operand.vmem [shape: f32[1,3], index: 0, kind: input, shape index: {}]   ;;  %s113_s1 = inlined_call_operand.<no memory space> [shape: f32[1], index: 1, kind: input, shape index: {}]   ;;  %s114_s2 = inlined_call_operand.vmem [shape: f32[8,3], index: 2, kind: input, shape index: {}]   ;;  %s115_s3 = inlined_call_operand.vmem [shape: f32[8,1], index: 3, kind: output, shape index: {}]  }
   0x1   :  { %s16_s14 = sshll.u32 %s112_s0, 4  ;;  %s17_s14 = int_to_ptr.vmem [resolvable:$true] %s16_s14 }
   0x2   :  { %s63_s15 = scalar_lea.vmem %s17_s14, 16  ;;  %p68_p1 = scmp.lt.s32.totalorder %s17_s14, %s17_s14 }
   0x3   :  { %p64_p0 = scmp.ne.s32.totalorder %s17_s14, %s63_s15  ;;  %p69_p2 = scmp.lt.s32.totalorder %s63_s15, %s63_s15 }
   0x5   :  { %p70_p3 = por %p69_p2, %p68_p1 }
   0x7   :  { %p71_p4 = pnand %p70_p3, %p64_p0 }
   0x9   :  { %74 = shalt.err (!%p71_p4)
}
   0xa   :  { %s77_s16 = smov [#allocation3]  }
   0xb   :  { %19 = dma.vmem_to_smem %s17_s14, 16, %s77_s16, [#allocation4]  }
   0xc   :  { %75 = dma.done.wait [#allocation4], 16  }
   0xd   :  { %76 = vsyncadd [#allocation4], 4294967280 }
   0xe   :  { %27 = sfence }
   0xf   :  { %s58_s17 = sld [smem:[#allocation3 + $0x1]]  ;;  %s59_s18 = sld [smem:[#allocation3 + $0x2]]  ;;  %v28_v0 = vld [vmem:[%s114_s2] sm:$0xff]  ;;  %v49_v9 = vstv %s113_s1  ;;  %vm51_vm0 = vcmask 7168  }
  0x10   :  { %s78_s0 = smov 127   ;;  %s79_s21 = smov 126  }
  0x11   :  { %s29_s22 = sld [smem:[#allocation3]] }
  0x15   :  { %v33_v1 = vstv %s58_s17  ;;  %v41_v3 = vstv %s59_s18 }
  0x16   :  { %v34_v2 = vmul.f32 %v33_v1, %v28_v0  ;;  %v42_v4 = vmul.f32 %v41_v3, %v28_v0 }
  0x17   :  { %v30_v5 = vstv %s29_s22 }
  0x18   :  { %36 = vrot.lane.b32.xlu0 %v34_v2, %s78_s0  ;;  %v31_v6 = vmul.f32 %v30_v5, %v28_v0 }
  0x1c   :  { %44 = vrot.lane.b32.xlu0 %v42_v4, %s79_s21 }
  0x8a   :  { %v37_v7 = vpop.permute.xlu0 %36 }
  0x8b   :  { %v39_v8 = vadd.f32 %v37_v7, %v31_v6 }
  0x8e   :  { %v45_v10 = vpop.permute.xlu0 %44 }
  0x8f   :  { %v47_v11 = vadd.f32 %v45_v10, %v39_v8 }
  0x91   :  { %v50_v12 = vadd.f32 %v49_v9, %v47_v11 }
  0x93   :  { %52 = vst.msk [vmem:[%s115_s3] sm:$0xff] %vm51_vm0, %v50_v12 }
  0x94   :  { %57 = vsyncpa [#allocation4], 1 }

</bundles_post_ra>
